<compile_context>
chip_gen: v7x
topology: tpu7x:2x2x1
jax: 0.10.0
libtpu: 0.0.40
codegen_flags: <defaults>
</compile_context>

<pallas_src>
import jax
import jax.numpy as jnp
from jax.experimental import pallas as pl
from jax.experimental.pallas import tpu as pltpu


def _round_up(x, m):
    return (x + m - 1) // m * m


def _pick_tile(total, target, mult=128):
    """Largest multiple of `mult` that divides `total` and is <= target."""
    if total <= target:
        return total
    t = (target // mult) * mult
    while t >= mult:
        if total % t == 0:
            return t
        t -= mult
    return total  # fallback: whole axis (total not a multiple of 128)


def _vmem_capacity_bytes():
    try:
        return int(pltpu.get_tpu_info().vmem_capacity_bytes)
    except Exception:
        return 128 * 1024 * 1024


def _stage1(x_ref, w1_ref, b1_ref, wg_ref, bg_ref):
    """x @ W1 + b1, silu(x @ Wg + bg), gated product — all in f32."""
    x = x_ref[...].astype(w1_ref.dtype)  # bf16 weights => bf16 MXU fast path
    h1 = jnp.dot(x, w1_ref[...], preferred_element_type=jnp.float32) + b1_ref[...]
    hg = jnp.dot(x, wg_ref[...], preferred_element_type=jnp.float32) + bg_ref[...]
    gated = h1 * (hg * jax.nn.sigmoid(hg))  # silu gate stays in f32 (EUP)
    # TODO(synk): training-mode dropout would use pltpu.prng_seed /
    # pltpu.prng_random_bits on `gated`; eval mode => identity.
    return gated


def swiglu_kernel_f32out(x_ref, w1_ref, b1_ref, wg_ref, bg_ref, w2_ref, b2_ref,
                         o_ref):
    """f32 output: accumulate the W2 contraction directly into o_ref."""
    j = pl.program_id(1)

    @pl.when(j == 0)
    def _init():
        o_ref[...] = jnp.zeros_like(o_ref)

    gated = _stage1(x_ref, w1_ref, b1_ref, wg_ref, bg_ref)
    o_ref[...] += jnp.dot(gated.astype(w2_ref.dtype), w2_ref[...],
                          preferred_element_type=jnp.float32).astype(o_ref.dtype)

    @pl.when(j == pl.num_programs(1) - 1)
    def _finalize():
        o_ref[...] = (o_ref[...] + b2_ref[...]).astype(o_ref.dtype)


def swiglu_kernel_scratch(x_ref, w1_ref, b1_ref, wg_ref, bg_ref, w2_ref, b2_ref,
                          o_ref, acc_ref):
    """Non-f32 output: accumulate in an f32 VMEM scratch, cast at finalize."""
    j = pl.program_id(1)

    @pl.when(j == 0)
    def _init():
        acc_ref[...] = jnp.zeros_like(acc_ref)

    gated = _stage1(x_ref, w1_ref, b1_ref, wg_ref, bg_ref)
    acc_ref[...] += jnp.dot(gated.astype(w2_ref.dtype), w2_ref[...],
                            preferred_element_type=jnp.float32)

    @pl.when(j == pl.num_programs(1) - 1)
    def _finalize():
        o_ref[...] = (acc_ref[...] + b2_ref[...]).astype(o_ref.dtype)


def swiglu_forward(x, w1, b1, wg, bg, w2, b2, *, tm=None, th=None):
    """x: (M, dim); w1/wg: (dim, 2*dim); w2: (2*dim, dim); biases (1, n)."""
    M, D = x.shape
    H = w1.shape[1]  # 2 * dim

    vmem_cap = _vmem_capacity_bytes()
    small_vmem = vmem_cap <= 64 * 1024 * 1024  # v7x-class TC

    # ---- generation-aware tile selection -----------------------------------
    # Row tile: as large as possible to amortize weight re-streaming (bigger on
    # 128 MiB-VMEM chips).  Hidden tile: smaller on v7x's 64 MiB VMEM.
    if tm is None:
        tm = 256 if small_vmem else 512
    if th is None:
        th = 256 if small_vmem else 512
    tm_eff = min(tm, _round_up(M, 8))
    m_pad = _round_up(M, tm_eff)
    th_eff = _pick_tile(H, th)
    n_h = H // th_eff
    n_m = m_pad // tm_eff

    if m_pad != M:
        x = jnp.pad(x, ((0, m_pad - M), (0, 0)))

    out_dtype = x.dtype
    use_scratch = jnp.dtype(out_dtype) != jnp.float32

    # ---- VMEM budget (per-operand itemsizes, temps, double buffering) ------
    x_item = jnp.dtype(x.dtype).itemsize
    w_item = jnp.dtype(w1.dtype).itemsize
    o_item = jnp.dtype(out_dtype).itemsize
    blk_bytes = (
        tm_eff * D * x_item            # x tile
        + 2 * D * th_eff * w_item      # W1 + Wg tiles
        + 2 * th_eff * w_item          # b1 + bg tiles
        + th_eff * D * w_item          # W2 tile
        + D * w_item                   # b2
        + tm_eff * D * o_item          # output tile
    )
    temporaries = 4 * tm_eff * th_eff * 4          # h1, hg, gated (+cast), f32
    scratch_bytes = tm_eff * D * 4 if use_scratch else 0
    vmem_need = 2 * blk_bytes + temporaries + scratch_bytes
    vmem_limit = int(min(max(int(vmem_need * 1.25), 32 * 1024 * 1024),
                         int(vmem_cap * 0.8)))

    # ---- cost estimate (helps XLA schedule around the custom call) ---------
    flops = 6 * m_pad * D * H + 4 * m_pad * H
    bytes_accessed = int(
        m_pad * D * x_item
        + n_m * (w1.size + wg.size + w2.size + b1.size + bg.size + b2.size) * w_item
        + m_pad * D * o_item
    )
    cost = pl.CostEstimate(flops=flops, transcendentals=m_pad * H,
                           bytes_accessed=bytes_accessed)

    kernel = swiglu_kernel_scratch if use_scratch else swiglu_kernel_f32out
    scratch = [pltpu.VMEM((tm_eff, D), jnp.float32)] if use_scratch else []

    # TODO(synk): optional third "parallel" grid axis over output columns of D
    # would keep both v7x TensorCores busy in the single-row-tile decode case.
    out = pl.pallas_call(
        kernel,
        out_shape=jax.ShapeDtypeStruct((m_pad, D), out_dtype),
        grid_spec=pltpu.PrefetchScalarGridSpec(
            num_scalar_prefetch=0,
            grid=(n_m, n_h),
            in_specs=[
                pl.BlockSpec((tm_eff, D), lambda i, j: (i, 0)),      # x
                pl.BlockSpec((D, th_eff), lambda i, j: (0, j)),      # W1
                pl.BlockSpec((1, th_eff), lambda i, j: (0, j)),      # b1
                pl.BlockSpec((D, th_eff), lambda i, j: (0, j)),      # Wg
                pl.BlockSpec((1, th_eff), lambda i, j: (0, j)),      # bg
                pl.BlockSpec((th_eff, D), lambda i, j: (j, 0)),      # W2
                pl.BlockSpec((1, D), lambda i, j: (0, 0)),           # b2
            ],
            out_specs=pl.BlockSpec((tm_eff, D), lambda i, j: (i, 0)),
            scratch_shapes=scratch,
        ),
        compiler_params=pltpu.CompilerParams(
            dimension_semantics=("parallel", "arbitrary"),
            vmem_limit_bytes=vmem_limit,
        ),
        cost_estimate=cost,
    )(x, w1, b1, wg, bg, w2, b2)

    return out[:M] if m_pad != M else out


def init_params(key, dim, dtype=jnp.float32):
    """Deterministic synthetic params matching nn.Linear shapes (stored transposed)."""
    k1, k2, k3, k4, k5, k6 = jax.random.split(key, 6)
    h = dim * 2
    s_in = 1.0 / (dim ** 0.5)
    s_h = 1.0 / (h ** 0.5)
    w1 = jax.random.uniform(k1, (dim, h), dtype, -s_in, s_in)
    b1 = jax.random.uniform(k2, (1, h), dtype, -s_in, s_in)
    wg = jax.random.uniform(k3, (dim, h), dtype, -s_in, s_in)
    bg = jax.random.uniform(k4, (1, h), dtype, -s_in, s_in)
    w2 = jax.random.uniform(k5, (h, dim), dtype, -s_h, s_h)
    b2 = jax.random.uniform(k6, (1, dim), dtype, -s_h, s_h)
    return w1, b1, wg, bg, w2, b2


def swiglu_ref(x, w1, b1, wg, bg, w2, b2):
    h1 = x @ w1 + b1
    hg = x @ wg + bg
    return (h1 * (hg * jax.nn.sigmoid(hg))) @ w2 + b2


if __name__ == "__main__":
    # Small but lane-dense shapes: dim is a multiple of 128 so stores are
    # full-lane vst's instead of masked partial stores.
    batch, seq, dim = 2, 8, 128
    key = jax.random.PRNGKey(0)
    kx, kp = jax.random.split(key)

    x = jax.random.normal(kx, (batch, seq, dim), jnp.float32)
    params = init_params(kp, dim)

    # Flatten leading dims; Linear acts on the last axis.
    x2d = x.reshape(batch * seq, dim)

    out2d = swiglu_forward(x2d, *params)
    out = out2d.reshape(batch, seq, dim)
    jax.block_until_ready(out)

    # Sanity check against a pure-JAX reference (f32 params, tight tolerance).
    ref = swiglu_ref(x2d, *params).reshape(batch, seq, dim)
    err = float(jnp.max(jnp.abs(out - ref)))
    assert jnp.allclose(out, ref, atol=1e-3, rtol=1e-3), err

    # bf16-weight smoke test (exercises the fast bf16 MXU path); finiteness only.
    bf16_params = tuple(p.astype(jnp.bfloat16) for p in params)
    out_bf16 = swiglu_forward(x2d, *bf16_params)
    jax.block_until_ready(out_bf16)
    assert bool(jnp.all(jnp.isfinite(out_bf16)))

    print("KERNEL_OK")
</pallas_src>

<mosaic_0001>
module attributes {stable_mosaic.version = 11 : i64} {
  func.func @swiglu_kernel_f32out(%arg0: i32, %arg1: i32, %arg2: memref<16x128xf32, #tpu.memory_space<vmem>>, %arg3: memref<128x256xf32, #tpu.memory_space<vmem>>, %arg4: memref<1x256xf32, #tpu.memory_space<vmem>>, %arg5: memref<128x256xf32, #tpu.memory_space<vmem>>, %arg6: memref<1x256xf32, #tpu.memory_space<vmem>>, %arg7: memref<256x128xf32, #tpu.memory_space<vmem>>, %arg8: memref<1x128xf32, #tpu.memory_space<vmem>>, %arg9: memref<16x128xf32, #tpu.memory_space<vmem>>) attributes {dimension_semantics = [#tpu.dimension_semantics<parallel>, #tpu.dimension_semantics<arbitrary>], iteration_bounds = array<i64: 1, 1>, scalar_prefetch = 0 : i64, scratch_operands = 0 : i64, tpu.core_type = #tpu.core_type<tc>, window_params = [{transform_indices = @transform_0, window_bounds = array<i64: 16, 128>}, {transform_indices = @transform_1, window_bounds = array<i64: 128, 256>}, {transform_indices = @transform_2, window_bounds = array<i64: 1, 256>}, {transform_indices = @transform_3, window_bounds = array<i64: 128, 256>}, {transform_indices = @transform_4, window_bounds = array<i64: 1, 256>}, {transform_indices = @transform_5, window_bounds = array<i64: 256, 128>}, {pipeline_mode = #tpu.pipeline_mode<synchronous>, transform_indices = @transform_6, window_bounds = array<i64: 1, 128>}, {transform_indices = @transform_7, window_bounds = array<i64: 16, 128>}]} {
    %c0_i32 = arith.constant 0 : i32
    %0 = arith.cmpi eq, %arg1, %c0_i32 : i32
    %1 = arith.extui %0 : i1 to i32
    %c0_i32_0 = arith.constant 0 : i32
    %2 = arith.cmpi ne, %1, %c0_i32_0 : i32
    scf.if %2 {
      %cst_21 = arith.constant 0.000000e+00 : f32
      %29 = vector.broadcast %cst_21 : f32 to vector<16x128xf32>
      %c0_22 = arith.constant 0 : index
      %c0_23 = arith.constant 0 : index
      %30 = vector.load %arg9[%c0_22, %c0_23] : memref<16x128xf32, #tpu.memory_space<vmem>>, vector<16x128xf32>
      tpu.vector_store %arg9[%c0_22, %c0_23], %29 {strides = array<i32>} : memref<16x128xf32, #tpu.memory_space<vmem>>, vector<16x128xf32>,
    } else {
    }
    %c0 = arith.constant 0 : index
    %c0_1 = arith.constant 0 : index
    %3 = vector.load %arg2[%c0, %c0_1] : memref<16x128xf32, #tpu.memory_space<vmem>>, vector<16x128xf32>
    %c0_2 = arith.constant 0 : index
    %c0_3 = arith.constant 0 : index
    %4 = vector.load %arg3[%c0_2, %c0_3] : memref<128x256xf32, #tpu.memory_space<vmem>>, vector<128x256xf32>
    %cst = arith.constant dense<0.000000e+00> : vector<16x256xf32>
    %5 = tpu.matmul %3, %4, %cst {dimension_numbers = #tpu.dot_dimension_numbers<[1], [0], [0], [1], [0, 0, 1, 1], [], []>} : vector<16x128xf32>, vector<128x256xf32>, vector<16x256xf32> -> vector<16x256xf32>
    %c0_4 = arith.constant 0 : index
    %c0_5 = arith.constant 0 : index
    %6 = vector.load %arg4[%c0_4, %c0_5] : memref<1x256xf32, #tpu.memory_space<vmem>>, vector<1x256xf32>
    %7 = vector.broadcast %6 : vector<1x256xf32> to vector<16x256xf32>
    %8 = arith.addf %5, %7 : vector<16x256xf32>
    %c0_6 = arith.constant 0 : index
    %c0_7 = arith.constant 0 : index
    %9 = vector.load %arg5[%c0_6, %c0_7] : memref<128x256xf32, #tpu.memory_space<vmem>>, vector<128x256xf32>
    %cst_8 = arith.constant dense<0.000000e+00> : vector<16x256xf32>
    %10 = tpu.matmul %3, %9, %cst_8 {dimension_numbers = #tpu.dot_dimension_numbers<[1], [0], [0], [1], [0, 0, 1, 1], [], []>} : vector<16x128xf32>, vector<128x256xf32>, vector<16x256xf32> -> vector<16x256xf32>
    %c0_9 = arith.constant 0 : index
    %c0_10 = arith.constant 0 : index
    %11 = vector.load %arg6[%c0_9, %c0_10] : memref<1x256xf32, #tpu.memory_space<vmem>>, vector<1x256xf32>
    %12 = vector.broadcast %11 : vector<1x256xf32> to vector<16x256xf32>
    %13 = arith.addf %10, %12 : vector<16x256xf32>
    %14 = arith.negf %13 : vector<16x256xf32>
    %15 = math.exp %14 : vector<16x256xf32>
    %cst_11 = arith.constant 1.000000e+00 : f32
    %16 = vector.broadcast %cst_11 : f32 to vector<16x256xf32>
    %17 = arith.addf %16, %15 : vector<16x256xf32>
    %18 = arith.divf %16, %17 : vector<16x256xf32>
    %19 = arith.mulf %13, %18 : vector<16x256xf32>
    %20 = arith.mulf %8, %19 : vector<16x256xf32>
    %c0_12 = arith.constant 0 : index
    %c0_13 = arith.constant 0 : index
    %21 = vector.load %arg9[%c0_12, %c0_13] : memref<16x128xf32, #tpu.memory_space<vmem>>, vector<16x128xf32>
    %c0_14 = arith.constant 0 : index
    %c0_15 = arith.constant 0 : index
    %22 = vector.load %arg7[%c0_14, %c0_15] : memref<256x128xf32, #tpu.memory_space<vmem>>, vector<256x128xf32>
    %cst_16 = arith.constant dense<0.000000e+00> : vector<16x128xf32>
    %23 = tpu.matmul %20, %22, %cst_16 {dimension_numbers = #tpu.dot_dimension_numbers<[1], [0], [0], [1], [0, 0, 1, 1], [], []>} : vector<16x256xf32>, vector<256x128xf32>, vector<16x128xf32> -> vector<16x128xf32>
    %24 = arith.addf %21, %23 : vector<16x128xf32>
    %c0_17 = arith.constant 0 : index
    %c0_18 = arith.constant 0 : index
    %25 = vector.load %arg9[%c0_17, %c0_18] : memref<16x128xf32, #tpu.memory_space<vmem>>, vector<16x128xf32>
    tpu.vector_store %arg9[%c0_17, %c0_18], %24 {strides = array<i32>} : memref<16x128xf32, #tpu.memory_space<vmem>>, vector<16x128xf32>,
    %c0_i32_19 = arith.constant 0 : i32
    %26 = arith.cmpi eq, %arg1, %c0_i32_19 : i32
    %27 = arith.extui %26 : i1 to i32
    %c0_i32_20 = arith.constant 0 : i32
    %28 = arith.cmpi ne, %27, %c0_i32_20 : i32
    scf.if %28 {
      %c0_21 = arith.constant 0 : index
      %c0_22 = arith.constant 0 : index
      %29 = vector.load %arg9[%c0_21, %c0_22] : memref<16x128xf32, #tpu.memory_space<vmem>>, vector<16x128xf32>
      %c0_23 = arith.constant 0 : index
      %c0_24 = arith.constant 0 : index
      %30 = vector.load %arg8[%c0_23, %c0_24] : memref<1x128xf32, #tpu.memory_space<vmem>>, vector<1x128xf32>
      %31 = vector.broadcast %30 : vector<1x128xf32> to vector<16x128xf32>
      %32 = arith.addf %29, %31 : vector<16x128xf32>
      %c0_25 = arith.constant 0 : index
      %c0_26 = arith.constant 0 : index
      %33 = vector.load %arg9[%c0_25, %c0_26] : memref<16x128xf32, #tpu.memory_space<vmem>>, vector<16x128xf32>
      tpu.vector_store %arg9[%c0_25, %c0_26], %32 {strides = array<i32>} : memref<16x128xf32, #tpu.memory_space<vmem>>, vector<16x128xf32>,
    } else {
    }
    return
  }
  func.func @transform_0(%arg0: i32, %arg1: i32) -> (i32, i32) {
    %c0_i32 = arith.constant 0 : i32
    %c0_i32_0 = arith.constant 0 : i32
    return %arg0, %c0_i32 : i32, i32
  }
  func.func @transform_1(%arg0: i32, %arg1: i32) -> (i32, i32) {
    %c0_i32 = arith.constant 0 : i32
    %c0_i32_0 = arith.constant 0 : i32
    return %c0_i32, %arg1 : i32, i32
  }
  func.func @transform_2(%arg0: i32, %arg1: i32) -> (i32, i32) {
    %c0_i32 = arith.constant 0 : i32
    %c0_i32_0 = arith.constant 0 : i32
    return %c0_i32, %arg1 : i32, i32
  }
  func.func @transform_3(%arg0: i32, %arg1: i32) -> (i32, i32) {
    %c0_i32 = arith.constant 0 : i32
    %c0_i32_0 = arith.constant 0 : i32
    return %c0_i32, %arg1 : i32, i32
  }
  func.func @transform_4(%arg0: i32, %arg1: i32) -> (i32, i32) {
    %c0_i32 = arith.constant 0 : i32
    %c0_i32_0 = arith.constant 0 : i32
    return %c0_i32, %arg1 : i32, i32
  }
  func.func @transform_5(%arg0: i32, %arg1: i32) -> (i32, i32) {
    %c0_i32 = arith.constant 0 : i32
    %c0_i32_0 = arith.constant 0 : i32
    return %arg1, %c0_i32 : i32, i32
  }
  func.func @transform_6(%arg0: i32, %arg1: i32) -> (i32, i32) {
    %c0_i32 = arith.constant 0 : i32
    %c0_i32_0 = arith.constant 0 : i32
    %c0_i32_1 = arith.constant 0 : i32
    return %c0_i32, %c0_i32_0 : i32, i32
  }
  func.func @transform_7(%arg0: i32, %arg1: i32) -> (i32, i32) {
    %c0_i32 = arith.constant 0 : i32
    %c0_i32_0 = arith.constant 0 : i32
    return %arg0, %c0_i32 : i32, i32
  }
}

</mosaic_0001>

<bundles_post_ra>
// kernel: tpu_custom_call.1
= control target key start
LH: loop header
LB: loop body
LE: loop exit
PB: predicated region body
PF: predicated region fallthrough
CT: control target
= control target key end

     0   :  { %12 = vsyncpa [#allocation3], 0  ;;  %s956_s0 = inlined_call_operand.hbm [shape: f32[16,128], index: 0, kind: input, shape index: {}]   ;;  %s957_s1 = inlined_call_operand.hbm [shape: f32[128,256], index: 1, kind: input, shape index: {}]   ;;  %s958_s2 = inlined_call_operand.vmem [shape: f32[1,256], index: 2, kind: input, shape index: {}]   ;;  %s959_s3 = inlined_call_operand.hbm [shape: f32[128,256], index: 3, kind: input, shape index: {}]   ;;  %s960_s4 = inlined_call_operand.vmem [shape: f32[1,256], index: 4, kind: input, shape index: {}]   ;;  %s961_s5 = inlined_call_operand.hbm [shape: f32[256,128], index: 5, kind: input, shape index: {}]   ;;  %s962_s6 = inlined_call_operand.vmem [shape: f32[1,128], index: 6, kind: input, shape index: {}]   ;;  %s963_s7 = inlined_call_operand.hbm [shape: f32[16,128], index: 7, kind: output, shape index: {}]  }
   0x1   :  { %13 = vsyncpa [#allocation6], 0 }
   0x2   :  { %14 = vsyncpa [#allocation9], 0 }
   0x3   :  { %15 = vsyncpa [#allocation4], 0  ;;  %s811_s24 = smov [#allocation5]   ;;  %s693_s28 = scalar_lea.hbm %s957_s1, 4096 }
   0x4   :  { %s33_s25 = sshll.u32 %s811_s24, 4  ;;  %p694_p0 = scmp.ne.s32.totalorder %s957_s1, %s693_s28  ;;  %s34_s25 = int_to_ptr.vmem [resolvable:$true] %s33_s25 }
   0x5   :  { %p697_p1 = scmp.lt.u32.totalorder %s693_s28, %s957_s1 }
   0x7   :  { %p699_p2 = pnand %p697_p1, %p694_p0 }
   0x9   :  { %702 = shalt.err (!%p699_p2)
}
   0xa   :  { %s703_s10 = scalar_lea.vmem %s34_s25, 4096  ;;  %p708_p4 = scmp.lt.s32.totalorder %s34_s25, %s34_s25 }
   0xb   :  { %p704_p3 = scmp.ne.s32.totalorder %s34_s25, %s703_s10  ;;  %p709_p5 = scmp.lt.s32.totalorder %s703_s10, %s703_s10 }
   0xd   :  { %p710_p6 = por %p709_p5, %p708_p4 }
   0xf   :  { %p711_p7 = pnand %p710_p6, %p704_p3 }
  0x11   :  { %714 = shalt.err (!%p711_p7)
}
  0x12   :  { %s812_s11 = smov 256   ;;  %s813_s12 = smov 16  }
  0x13   :  { %39 = dma.hbm_to_vmem [thread:$0]  %s957_s1, 4096, %s34_s25, [#allocation6], %s812_s11, %s812_s11, %s813_s12  }
  0x14   :  { %s814_s15 = smov [#allocation2]   ;;  %s715_s19 = scalar_lea.hbm %s956_s0, 256 }
  0x15   :  { %s21_s16 = sshll.u32 %s814_s15, 4  ;;  %p716_p8 = scmp.ne.s32.totalorder %s956_s0, %s715_s19  ;;  %s22_s16 = int_to_ptr.vmem [resolvable:$true] %s21_s16 }
  0x16   :  { %p719_p9 = scmp.lt.u32.totalorder %s715_s19, %s956_s0 }
  0x18   :  { %p721_p10 = pnand %p719_p9, %p716_p8 }
  0x1a   :  { %724 = shalt.err (!%p721_p10)
}
  0x1b   :  { %s725_s24 = scalar_lea.vmem %s22_s16, 256  ;;  %p730_p12 = scmp.lt.s32.totalorder %s22_s16, %s22_s16 }
  0x1c   :  { %p726_p11 = scmp.ne.s32.totalorder %s22_s16, %s725_s24  ;;  %p731_p13 = scmp.lt.s32.totalorder %s725_s24, %s725_s24 }
  0x1e   :  { %p732_p0 = por %p731_p13, %p730_p12 }
  0x20   :  { %p733_p1 = pnand %p732_p0, %p726_p11 }
  0x22   :  { %736 = shalt.err (!%p733_p1)
}
  0x23   :  { %s815_s1 = smov 128   ;;  %s816_s25 = smov 8  }
  0x24   :  { %27 = dma.hbm_to_vmem [thread:$0]  %s956_s0, 256, %s22_s16, [#allocation3], %s815_s1, %s815_s1, %s816_s25  }
  0x25   :  { %s817_s28 = smov [#allocation7]   ;;  %s818_s30 = smov [#allocation8]  }
  0x26   :  { %s47_s29 = sshll.u32 %s817_s28, 4  ;;  %s61_s8 = sshll.u32 %s818_s30, 4  ;;  %s48_s29 = int_to_ptr.vmem [resolvable:$true] %s47_s29  ;;  %s891_s8 = int_to_ptr.vmem [resolvable:$true] %s61_s8 }
  0x27   :  { %s737_s13 = scalar_lea.hbm %s959_s3, 4096 }
  0x28   :  { %p738_p2 = scmp.ne.s32.totalorder %s959_s3, %s737_s13  ;;  %p741_p3 = scmp.lt.u32.totalorder %s737_s13, %s959_s3 }
  0x2a   :  { %p743_p4 = pnand %p741_p3, %p738_p2 }
  0x2c   :  { %746 = shalt.err (!%p743_p4)
}
  0x2d   :  { %s747_s0 = scalar_lea.vmem %s48_s29, 4096  ;;  %p752_p6 = scmp.lt.s32.totalorder %s48_s29, %s48_s29 }
  0x2e   :  { %p748_p5 = scmp.ne.s32.totalorder %s48_s29, %s747_s0  ;;  %p753_p7 = scmp.lt.s32.totalorder %s747_s0, %s747_s0 }
  0x30   :  { %p754_p8 = por %p753_p7, %p752_p6 }
  0x32   :  { %p755_p9 = pnand %p754_p8, %p748_p5 }
  0x34   :  { %758 = shalt.err (!%p755_p9)
}
  0x35   :  { %53 = dma.hbm_to_vmem [thread:$0]  %s959_s3, 4096, %s48_s29, [#allocation6], %s812_s11, %s812_s11, %s813_s12  }
  0x36   :  { %s759_s22 = scalar_lea.hbm %s961_s5, 4096 }
  0x37   :  { %p760_p10 = scmp.ne.s32.totalorder %s961_s5, %s759_s22  ;;  %p763_p11 = scmp.lt.u32.totalorder %s759_s22, %s961_s5 }
  0x39   :  { %p765_p12 = pnand %p763_p11, %p760_p10 }
  0x3b   :  { %768 = shalt.err (!%p765_p12)
}
  0x3c   :  { %s769_s28 = scalar_lea.vmem %s891_s8, 4096  ;;  %p774_p0 = scmp.lt.s32.totalorder %s891_s8, %s891_s8 }
  0x3d   :  { %p770_p13 = scmp.ne.s32.totalorder %s891_s8, %s769_s28  ;;  %p775_p1 = scmp.lt.s32.totalorder %s769_s28, %s769_s28 }
  0x3f   :  { %p776_p2 = por %p775_p1, %p774_p0 }
  0x41   :  { %p777_p3 = pnand %p776_p2, %p770_p13 }
  0x43   :  { %780 = shalt.err (!%p777_p3)
}
  0x44   :  { %67 = dma.hbm_to_vmem [thread:$0]  %s961_s5, 4096, %s891_s8, [#allocation9], %s815_s1, %s815_s1, %s816_s25  }
  0x45   :  { %803 = dma.done.wait [#allocation3], 256  }
  0x46   :  { %804 = vsyncadd [#allocation3], 4294967040 }
  0x47   :  { %805 = dma.done.wait [#allocation6], 8192  }
  0x48   :  { %806 = vsyncadd [#allocation6], 4294959104 }
  0x49   :  { %807 = dma.done.wait [#allocation9], 4096  }
  0x4a   :  { %808 = vsyncadd [#allocation9], 4294963200  ;;  %v819_v0 = vmov 0.0   ;;  %v212_v1 = vld [vmem:[#allocation7 + $0x8] sm:$0xff]  ;;  %v214_v2 = vld [vmem:[#allocation7 + $0x18] sm:$0xff]  ;;  %s820_s8 = smov [#allocation10]  }
  0x4b   :  { %319 = vmatprep.mubr.f32.mxu1 %v819_v0  ;;  %198 = vmatprep.mubr.f32.mxu0 %v819_v0  ;;  %v211_v3 = vld [vmem:[#allocation7] sm:$0xff]  ;;  %v587_v4 = vpack.c.bf16 %v214_v2, %v212_v1  ;;  %v213_v5 = vld [vmem:[#allocation7 + $0x10] sm:$0xff]  ;;  %v216_v6 = vld [vmem:[#allocation7 + $0x28] sm:$0xff]  ;;  %s498_s9 = sshll.u32 %s820_s8, 4  ;;  %s499_s9 = int_to_ptr.vmem [resolvable:$true] %s498_s9 }
  0x4c   :  { %v218_v7 = vld [vmem:[#allocation7 + $0x38] sm:$0xff]  ;;  %v589_v8 = vpack.c.bf16 %v213_v5, %v211_v3  ;;  %v215_v10 = vld [vmem:[#allocation7 + $0x20] sm:$0xff]  ;;  %v217_v11 = vld [vmem:[#allocation7 + $0x30] sm:$0xff]  ;;  %s781_s10 = scalar_lea.vmem %s499_s9, 256  ;;  %p786_p5 = scmp.lt.s32.totalorder %s499_s9, %s499_s9 }
  0x4d   :  { %v591_v9 = vpack.c.bf16 %v218_v7, %v216_v6  ;;  %v220_v12 = vld [vmem:[#allocation7 + $0x48] sm:$0xff]  ;;  %588 = vmatprep.subr.bf16.mxu1 %v587_v4  ;;  %v222_v13 = vld [vmem:[#allocation7 + $0x58] sm:$0xff]  ;;  %v593_v14 = vpack.c.bf16 %v217_v11, %v215_v10  ;;  %v219_v16 = vld [vmem:[#allocation7 + $0x40] sm:$0xff]  ;;  %p782_p4 = scmp.ne.s32.totalorder %s499_s9, %s781_s10  ;;  %p787_p6 = scmp.lt.s32.totalorder %s781_s10, %s781_s10 }
  0x4e   :  { %590 = vmatpush1.bf16.msra.mxu1 %v589_v8  ;;  %v595_v15 = vpack.c.bf16 %v222_v13, %v220_v12  ;;  %v221_v17 = vld [vmem:[#allocation7 + $0x50] sm:$0xff]  ;;  %v224_v18 = vld [vmem:[#allocation7 + $0x68] sm:$0xff]  ;;  %v226_v19 = vld [vmem:[#allocation7 + $0x78] sm:$0xff] }
  0x4f   :  { %592 = vmatprep.subr.bf16.mxu1 %v591_v9  ;;  %v597_v20 = vpack.c.bf16 %v221_v17, %v219_v16  ;;  %v223_v21 = vld [vmem:[#allocation7 + $0x60] sm:$0xff]  ;;  %v225_v22 = vld [vmem:[#allocation7 + $0x70] sm:$0xff]  ;;  %v599_v23 = vpack.c.bf16 %v226_v19, %v224_v18  ;;  %v228_v24 = vld [vmem:[#allocation7 + $0x88] sm:$0xff]  ;;  %p788_p7 = por %p787_p6, %p786_p5 }
  0x50   :  { %v91_v25 = vld [vmem:[#allocation5 + $0x8] sm:$0xff]  ;;  %v93_v26 = vld [vmem:[#allocation5 + $0x18] sm:$0xff]  ;;  %v90_v29 = vld [vmem:[#allocation5] sm:$0xff]  ;;  %v601_v34 = vpack.c.bf16 %v225_v22, %v223_v21 }
  0x51   :  { %v230_v27 = vld [vmem:[#allocation7 + $0x98] sm:$0xff]  ;;  %v555_v28 = vpack.c.bf16 %v93_v26, %v91_v25  ;;  %v92_v30 = vld [vmem:[#allocation5 + $0x10] sm:$0xff]  ;;  %v227_v31 = vld [vmem:[#allocation7 + $0x80] sm:$0xff]  ;;  %p789_p8 = pnand %p788_p7, %p782_p4 }
  0x52   :  { %594 = vmatpush1.bf16.msra.mxu1 %v593_v14  ;;  %v229_v32 = vld [vmem:[#allocation7 + $0x90] sm:$0xff]  ;;  %v557_v33 = vpack.c.bf16 %v92_v30, %v90_v29  ;;  %v232_v35 = vld [vmem:[#allocation7 + $0xa8] sm:$0xff]  ;;  %v97_v37 = vld [vmem:[#allocation5 + $0x38] sm:$0xff]  ;;  %v603_v39 = vpack.c.bf16 %v230_v27, %v228_v24 }
  0x53   :  { %596 = vmatprep.subr.bf16.mxu1 %v595_v15  ;;  %556 = vmatprep.subr.bf16.mxu0 %v555_v28  ;;  %v95_v36 = vld [vmem:[#allocation5 + $0x28] sm:$0xff]  ;;  %v94_v38 = vld [vmem:[#allocation5 + $0x20] sm:$0xff]  ;;  %v234_v40 = vld [vmem:[#allocation7 + $0xb8] sm:$0xff]  ;;  %v605_v51 = vpack.c.bf16 %v229_v32, %v227_v31 }
  0x54   :  { %558 = vmatpush1.bf16.msra.mxu0 %v557_v33  ;;  %v559_v41 = vpack.c.bf16 %v97_v37, %v95_v36  ;;  %v96_v42 = vld [vmem:[#allocation5 + $0x30] sm:$0xff]  ;;  %v99_v43 = vld [vmem:[#allocation5 + $0x48] sm:$0xff]  ;;  %v101_v45 = vld [vmem:[#allocation5 + $0x58] sm:$0xff]  ;;  %v607_v52 = vpack.c.bf16 %v234_v40, %v232_v35 }
  0x55   :  { %v561_v44 = vpack.c.bf16 %v96_v42, %v94_v38  ;;  %v98_v46 = vld [vmem:[#allocation5 + $0x40] sm:$0xff]  ;;  %v100_v47 = vld [vmem:[#allocation5 + $0x50] sm:$0xff]  ;;  %v563_v48 = vpack.c.bf16 %v101_v45, %v99_v43  ;;  %v103_v49 = vld [vmem:[#allocation5 + $0x68] sm:$0xff] }
  0x56   :  { %598 = vmatpush1.bf16.msra.mxu1 %v597_v20  ;;  %560 = vmatprep.subr.bf16.mxu0 %v559_v41  ;;  %v105_v50 = vld [vmem:[#allocation5 + $0x78] sm:$0xff]  ;;  %v231_v53 = vld [vmem:[#allocation7 + $0xa0] sm:$0xff]  ;;  %v233_v54 = vld [vmem:[#allocation7 + $0xb0] sm:$0xff]  ;;  %v565_v56 = vpack.c.bf16 %v100_v47, %v98_v46 }
  0x57   :  { %600 = vmatprep.subr.bf16.mxu1 %v599_v23  ;;  %v236_v55 = vld [vmem:[#allocation7 + $0xc8] sm:$0xff]  ;;  %v238_v57 = vld [vmem:[#allocation7 + $0xd8] sm:$0xff]  ;;  %v567_v58 = vpack.c.bf16 %v105_v50, %v103_v49  ;;  %v102_v59 = vld [vmem:[#allocation5 + $0x60] sm:$0xff]  ;;  %v609_v63 = vpack.c.bf16 %v233_v54, %v231_v53 }
  0x58   :  { %562 = vmatpush1.bf16.msra.mxu0 %v561_v44  ;;  %v104_v60 = vld [vmem:[#allocation5 + $0x70] sm:$0xff]  ;;  %v107_v61 = vld [vmem:[#allocation5 + $0x88] sm:$0xff]  ;;  %v109_v62 = vld [vmem:[#allocation5 + $0x98] sm:$0xff]  ;;  %v611_v1 = vpack.c.bf16 %v238_v57, %v236_v55 }
  0x59   :  { %564 = vmatprep.subr.bf16.mxu0 %v563_v48  ;;  %v235_v2 = vld [vmem:[#allocation7 + $0xc0] sm:$0xff]  ;;  %v237_v3 = vld [vmem:[#allocation7 + $0xd0] sm:$0xff]  ;;  %v240_v4 = vld [vmem:[#allocation7 + $0xe8] sm:$0xff]  ;;  %v569_v5 = vpack.c.bf16 %v104_v60, %v102_v59  ;;  %v571_v7 = vpack.c.bf16 %v109_v62, %v107_v61 }
  0x5a   :  { %602 = vmatpush1.bf16.msra.mxu1 %v601_v34  ;;  %v242_v6 = vld [vmem:[#allocation7 + $0xf8] sm:$0xff]  ;;  %v106_v8 = vld [vmem:[#allocation5 + $0x80] sm:$0xff]  ;;  %v108_v9 = vld [vmem:[#allocation5 + $0x90] sm:$0xff]  ;;  %v613_v12 = vpack.c.bf16 %v237_v3, %v235_v2 }
  0x5b   :  { %604 = vmatprep.subr.bf16.mxu1 %v603_v39  ;;  %v111_v10 = vld [vmem:[#allocation5 + $0xa8] sm:$0xff]  ;;  %v113_v11 = vld [vmem:[#allocation5 + $0xb8] sm:$0xff]  ;;  %v615_v13 = vpack.c.bf16 %v242_v6, %v240_v4  ;;  %v239_v14 = vld [vmem:[#allocation7 + $0xe0] sm:$0xff]  ;;  %v573_v16 = vpack.c.bf16 %v108_v9, %v106_v8 }
  0x5c   :  { %566 = vmatpush1.bf16.msra.mxu0 %v565_v56  ;;  %v241_v15 = vld [vmem:[#allocation7 + $0xf0] sm:$0xff]  ;;  %v575_v17 = vpack.c.bf16 %v113_v11, %v111_v10  ;;  %v110_v18 = vld [vmem:[#allocation5 + $0xa0] sm:$0xff]  ;;  %v115_v20 = vld [vmem:[#allocation5 + $0xc8] sm:$0xff] }
  0x5d   :  { %568 = vmatprep.subr.bf16.mxu0 %v567_v58  ;;  %v112_v19 = vld [vmem:[#allocation5 + $0xb0] sm:$0xff]  ;;  %v117_v21 = vld [vmem:[#allocation5 + $0xd8] sm:$0xff]  ;;  %v617_v22 = vpack.c.bf16 %v241_v15, %v239_v14  ;;  %v114_v25 = vld [vmem:[#allocation5 + $0xc0] sm:$0xff] }
  0x5e   :  { %606 = vmatpush1.bf16.msra.mxu1 %v605_v51  ;;  %v577_v23 = vpack.c.bf16 %v112_v19, %v110_v18  ;;  %v579_v24 = vpack.c.bf16 %v117_v21, %v115_v20  ;;  %v116_v26 = vld [vmem:[#allocation5 + $0xd0] sm:$0xff]  ;;  %v119_v27 = vld [vmem:[#allocation5 + $0xe8] sm:$0xff]  ;;  %v121_v28 = vld [vmem:[#allocation5 + $0xf8] sm:$0xff]  ;;  %v124_v20 = vlaneseq }
  0x5f   :  { %608 = vmatprep.subr.bf16.mxu1 %v607_v52  ;;  %v88_v29 = vld [vmem:[#allocation2] sm:$0xff]  ;;  %v581_v30 = vpack.c.bf16 %v116_v26, %v114_v25  ;;  %v583_v31 = vpack.c.bf16 %v121_v28, %v119_v27  ;;  %v118_v32 = vld [vmem:[#allocation5 + $0xe0] sm:$0xff]  ;;  %v89_v34 = vld [vmem:[#allocation2 + $0x8] sm:$0xff] }
  0x60   :  { %570 = vmatpush1.bf16.msra.mxu0 %v569_v5  ;;  %v120_v33 = vld [vmem:[#allocation5 + $0xf0] sm:$0xff]  ;;  %v382_v36 = vld [vmem:[#allocation8 + $0x80] sm:$0xff]  ;;  %v383_v37 = vld [vmem:[#allocation8 + $0x88] sm:$0xff]  ;;  %v125_v21 = vshrl.u32 %v124_v20, 7 }
  0x61   :  { %572 = vmatprep.subr.bf16.mxu0 %v571_v7  ;;  %v585_v35 = vpack.c.bf16 %v120_v33, %v118_v32  ;;  %v619_v38 = vpack.c.bf16 %v383_v37, %v382_v36  ;;  %v366_v39 = vld [vmem:[#allocation8] sm:$0xff]  ;;  %v367_v40 = vld [vmem:[#allocation8 + $0x8] sm:$0xff]  ;;  %v384_v42 = vld [vmem:[#allocation8 + $0x90] sm:$0xff] }
  0x62   :  { %610 = vmatpush1.bf16.msra.mxu1 %v609_v63  ;;  %v621_v41 = vpack.c.bf16 %v367_v40, %v366_v39  ;;  %v385_v43 = vld [vmem:[#allocation8 + $0x98] sm:$0xff]  ;;  %v368_v45 = vld [vmem:[#allocation8 + $0x10] sm:$0xff]  ;;  %v387_v48 = vld [vmem:[#allocation8 + $0xa8] sm:$0xff] }
  0x63   :  { %612 = vmatprep.subr.bf16.mxu1 %v611_v1  ;;  %v623_v44 = vpack.c.bf16 %v385_v43, %v384_v42  ;;  %v369_v46 = vld [vmem:[#allocation8 + $0x18] sm:$0xff]  ;;  %v370_v50 = vld [vmem:[#allocation8 + $0x20] sm:$0xff]  ;;  %v371_v51 = vld [vmem:[#allocation8 + $0x28] sm:$0xff] }
  0x64   :  { %574 = vmatpush1.bf16.msra.mxu0 %v573_v16  ;;  %v625_v47 = vpack.c.bf16 %v369_v46, %v368_v45  ;;  %v629_v52 = vpack.c.bf16 %v371_v51, %v370_v50  ;;  %v388_v53 = vld [vmem:[#allocation8 + $0xb0] sm:$0xff]  ;;  %v389_v54 = vld [vmem:[#allocation8 + $0xb8] sm:$0xff]  ;;  %v390_v59 = vld [vmem:[#allocation8 + $0xc0] sm:$0xff] }
  0x65   :  { %576 = vmatprep.subr.bf16.mxu0 %v575_v17  ;;  %v631_v55 = vpack.c.bf16 %v389_v54, %v388_v53  ;;  %v372_v56 = vld [vmem:[#allocation8 + $0x30] sm:$0xff]  ;;  %v373_v57 = vld [vmem:[#allocation8 + $0x38] sm:$0xff]  ;;  %v391_v60 = vld [vmem:[#allocation8 + $0xc8] sm:$0xff] }
  0x66   :  { %614 = vmatpush1.bf16.msra.mxu1 %v613_v12  ;;  %v633_v58 = vpack.c.bf16 %v373_v57, %v372_v56  ;;  %v635_v61 = vpack.c.bf16 %v391_v60, %v390_v59  ;;  %v374_v62 = vld [vmem:[#allocation8 + $0x40] sm:$0xff]  ;;  %v375_v63 = vld [vmem:[#allocation8 + $0x48] sm:$0xff]  ;;  %v392_v2 = vld [vmem:[#allocation8 + $0xd0] sm:$0xff] }
  0x67   :  { %616 = vmatprep.subr.bf16.mxu1 %v615_v13  ;;  %v637_v1 = vpack.c.bf16 %v375_v63, %v374_v62  ;;  %v393_v3 = vld [vmem:[#allocation8 + $0xd8] sm:$0xff]  ;;  %v376_v5 = vld [vmem:[#allocation8 + $0x50] sm:$0xff]  ;;  %v394_v8 = vld [vmem:[#allocation8 + $0xe0] sm:$0xff] }
  0x68   :  { %578 = vmatpush1.bf16.msra.mxu0 %v577_v23  ;;  %v639_v4 = vpack.c.bf16 %v393_v3, %v392_v2  ;;  %v377_v6 = vld [vmem:[#allocation8 + $0x58] sm:$0xff]  ;;  %v395_v9 = vld [vmem:[#allocation8 + $0xe8] sm:$0xff]  ;;  %v378_v11 = vld [vmem:[#allocation8 + $0x60] sm:$0xff] }
  0x69   :  { %580 = vmatprep.subr.bf16.mxu0 %v579_v24  ;;  %v641_v7 = vpack.c.bf16 %v377_v6, %v376_v5  ;;  %v643_v10 = vpack.c.bf16 %v395_v9, %v394_v8  ;;  %v379_v12 = vld [vmem:[#allocation8 + $0x68] sm:$0xff]  ;;  %v396_v14 = vld [vmem:[#allocation8 + $0xf0] sm:$0xff]  ;;  %v397_v15 = vld [vmem:[#allocation8 + $0xf8] sm:$0xff]  ;;  %v130_v24 = vsub.s32 1, %v125_v21 }
  0x6a   :  { %618 = vmatpush1.bf16.msra.mxu1 %v617_v22  ;;  %v645_v13 = vpack.c.bf16 %v379_v12, %v378_v11  ;;  %v647_v16 = vpack.c.bf16 %v397_v15, %v396_v14  ;;  %v380_v17 = vld [vmem:[#allocation8 + $0x70] sm:$0xff]  ;;  %v381_v18 = vld [vmem:[#allocation8 + $0x78] sm:$0xff]  ;;  %v126_v22 = vsub.s32 0, %v125_v21 }
  0x6b   :  { %651 = vmatprep.subr.bf16.mxu1 %v619_v38  ;;  %v649_v19 = vpack.c.bf16 %v381_v18, %v380_v17  ;;  %v243_v23 = vld [vmem:[%s960_s4] sm:$0x3] }
  0x6c   :  { %582 = vmatpush1.bf16.msra.mxu0 %v581_v30  ;;  %v248_v25 = vrot.slane %v243_v23, %v126_v22  ;;  %v252_v26 = vrot.slane %v243_v23, %v130_v24  ;;  %v516_v9 = vld [vmem:[%s962_s6] ss:$0 sm:$0xff] }
  0x6d   :  { %320 = vmatmul.mubr.f32.vlgmr.msra.gmra.mrb[0].mxu1 %v88_v29  ;;  %584 = vmatprep.subr.bf16.mxu0 %v583_v31 }
  0x6e   :  { %325 = vmatprep.mubr.f32.mxu1 %v819_v0  ;;  %659 = vmatpush3.bf16.msra.mxu1 %v621_v41 }
  0x6f   :  { %652 = vmatprep.subr.bf16.mxu1 %v623_v44 }
  0x70   :  { %586 = vmatpush1.bf16.msra.mxu0 %v585_v35 }
  0x71   :  { %326 = vmatmul.mubr.f32.gmra.mrb[2].mxu1 %v89_v34  ;;  %620 = vmatprep.subr.bf16.mxu0 %v619_v38 }
  0x72   :  { %660 = vmatpush3.bf16.msra.mxu1 %v625_v47 }
  0x73   :  { %199 = vmatmul.mubr.f32.vlgmr.msra.gmra.mrb[0].mxu0 %v88_v29 }
  0x74   :  { %204 = vmatprep.mubr.f32.mxu0 %v819_v0  ;;  %622 = vmatpush3.bf16.msra.mxu0 %v621_v41  ;;  %v386_v0 = vld [vmem:[#allocation8 + $0xa0] sm:$0xff] }
  0x75   :  { %624 = vmatprep.subr.bf16.mxu0 %v623_v44  ;;  %v627_v49 = vpack.c.bf16 %v387_v48, %v386_v0 }
  0x77   :  { %205 = vmatmul.mubr.f32.gmra.mrb[2].mxu0 %v89_v34  ;;  %653 = vmatprep.subr.bf16.mxu1 %v627_v49 }
  0x78   :  { %626 = vmatpush3.bf16.msra.mxu0 %v625_v47  ;;  %661 = vmatpush3.bf16.msra.mxu1 %v629_v52 }
  0x79   :  { %628 = vmatprep.subr.bf16.mxu0 %v627_v49  ;;  %654 = vmatprep.subr.bf16.mxu1 %v631_v55  ;;  %v122_v49 = vld [vmem:[%s958_s2] sm:$0x3] }
  0x7a   :  { %v127_v51 = vrot.slane %v122_v49, %v126_v22 }
  0x7c   :  { %630 = vmatpush3.bf16.msra.mxu0 %v629_v52  ;;  %662 = vmatpush3.bf16.msra.mxu1 %v633_v58  ;;  %v131_v52 = vrot.slane %v122_v49, %v130_v24 }
  0x7d   :  { %632 = vmatprep.subr.bf16.mxu0 %v631_v55  ;;  %655 = vmatprep.subr.bf16.mxu1 %v635_v61 }
  0x80   :  { %634 = vmatpush3.bf16.msra.mxu0 %v633_v58  ;;  %663 = vmatpush3.bf16.msra.mxu1 %v637_v1 }
  0x81   :  { %636 = vmatprep.subr.bf16.mxu0 %v635_v61  ;;  %656 = vmatprep.subr.bf16.mxu1 %v639_v4 }
  0x84   :  { %638 = vmatpush3.bf16.msra.mxu0 %v637_v1  ;;  %664 = vmatpush3.bf16.msra.mxu1 %v641_v7 }
  0x85   :  { %640 = vmatprep.subr.bf16.mxu0 %v639_v4  ;;  %657 = vmatprep.subr.bf16.mxu1 %v643_v10 }
  0x88   :  { %642 = vmatpush3.bf16.msra.mxu0 %v641_v7  ;;  %665 = vmatpush3.bf16.msra.mxu1 %v645_v13 }
  0x89   :  { %644 = vmatprep.subr.bf16.mxu0 %v643_v10  ;;  %658 = vmatprep.subr.bf16.mxu1 %v647_v16 }
  0x8c   :  { %646 = vmatpush3.bf16.msra.mxu0 %v645_v13  ;;  %666 = vmatpush3.bf16.msra.mxu1 %v649_v19 }
  0x8d   :  { %648 = vmatprep.subr.bf16.mxu0 %v647_v16 }
  0x90   :  { %650 = vmatpush3.bf16.msra.mxu0 %v649_v19 }
 0x140   :  { %v321_v27 = vpop.f32.mrb[0].mxu1 }
 0x141   :  { %v322_v28 = vadd.f32 %v321_v27, %v248_v25  ;;  %v323_v29 = vpop.f32.mrb[1].mxu1 }
 0x142   :  { %v324_v30 = vadd.f32 %v323_v29, %v252_v26 }
 0x143   :  { %v512_v31 = vmul.f32 -1.442695, %v322_v28 }
 0x144   :  { %v513_v32 = vmul.f32 -1.442695, %v324_v30  ;;  %v327_v33 = vpop.f32.mrb[2].mxu1 }
 0x145   :  { %677 = vpow2.f32 %v512_v31  ;;  %v328_v34 = vadd.f32 %v327_v33, %v248_v25  ;;  %v329_v35 = vpop.f32.mrb[3].mxu1 }
 0x146   :  { %679 = vpow2.f32 %v513_v32  ;;  %v330_v36 = vadd.f32 %v329_v35, %v252_v26  ;;  %v200_v39 = vpop.f32.mrb[0].mxu0 }
 0x147   :  { %v514_v37 = vmul.f32 -1.442695, %v328_v34  ;;  %v202_v40 = vpop.f32.mrb[1].mxu0  ;;  %v201_v53 = vadd.f32 %v200_v39, %v127_v51 }
 0x148   :  { %v515_v38 = vmul.f32 -1.442695, %v330_v36  ;;  %v203_v55 = vadd.f32 %v202_v40, %v131_v52 }
 0x149   :  { %681 = vpow2.f32 %v514_v37 }
 0x14a   :  { %683 = vpow2.f32 %v515_v38  ;;  %v206_v41 = vpop.f32.mrb[2].mxu0 }
 0x14b   :  { %v208_v42 = vpop.f32.mrb[3].mxu0  ;;  %v207_v60 = vadd.f32 %v206_v41, %v127_v51 }
 0x14c   :  { %v209_v63 = vadd.f32 %v208_v42, %v131_v52 }
 0x14f   :  { %v678_v43 = vpop.eup %677 }
 0x150   :  { %v680_v44 = vpop.eup %679  ;;  %v344_v45 = vadd.f32 1.0, %v678_v43 }
 0x151   :  { %v345_v46 = vadd.f32 1.0, %v680_v44 }
 0x152   :  { %685 = vrcp.f32 %v344_v45 }
 0x153   :  { %v682_v47 = vpop.eup %681  ;;  %687 = vrcp.f32 %v345_v46 }
 0x154   :  { %v684_v0 = vpop.eup %683  ;;  %v346_v48 = vadd.f32 1.0, %v682_v47 }
 0x155   :  { %v347_v50 = vadd.f32 1.0, %v684_v0 }
 0x156   :  { %689 = vrcp.f32 %v346_v48 }
 0x157   :  { %691 = vrcp.f32 %v347_v50 }
 0x15c   :  { %v686_v54 = vpop.eup %685 }
 0x15d   :  { %v688_v56 = vpop.eup %687  ;;  %v356_v57 = vmul.f32 %v686_v54, %v322_v28 }
 0x15e   :  { %v357_v58 = vmul.f32 %v688_v56, %v324_v30 }
 0x15f   :  { %v360_v59 = vmul.f32 %v356_v57, %v201_v53 }
 0x160   :  { %v690_v61 = vpop.eup %689  ;;  %v361_v62 = vmul.f32 %v357_v58, %v203_v55 }
 0x161   :  { %v692_v1 = vpop.eup %691  ;;  %v358_v2 = vmul.f32 %v690_v61, %v328_v34 }
 0x162   :  { %v359_v3 = vmul.f32 %v692_v1, %v330_v36  ;;  %462 = vmatprep.mubr.f32.mxu0 %v361_v62 }
 0x163   :  { %v362_v4 = vmul.f32 %v358_v2, %v207_v60  ;;  %463 = vmatmul.mubr.f32.vlgmr.msra.gmra.mrb[4].mxu0 %v360_v59 }
 0x164   :  { %v363_v5 = vmul.f32 %v359_v3, %v209_v63 }
 0x166   :  { %467 = vmatprep.mubr.f32.mxu1 %v363_v5 }
 0x167   :  { %468 = vmatmul.mubr.f32.vlgmr.msra.gmra.mrb[4].mxu1 %v362_v4 }
 0x236   :  { %v549_v6 = vpop.f32.mrb[4].mxu0 }
 0x237   :  { %v550_v7 = vpop.f32.mrb[5].mxu0 }
 0x238   :  { %v551_v8 = vadd.f32 %v550_v7, %v549_v6 }
 0x23a   :  { %v552_v10 = vpop.f32.mrb[4].mxu1  ;;  %v489_v13 = vadd.f32 %v551_v8, %v516_v9 }
 0x23b   :  { %v553_v11 = vpop.f32.mrb[5].mxu1 }
 0x23c   :  { %v554_v12 = vadd.f32 %v553_v11, %v552_v10  ;;  %491 = vst [vmem:[#allocation10] sm:$0xff] %v489_v13 }
 0x23e   :  { %v490_v14 = vadd.f32 %v554_v12, %v516_v9 }
 0x240   :  { %492 = vst [vmem:[#allocation10 + $0x8] sm:$0xff] %v490_v14 }
 0x241   :  { %792 = shalt.err (!%p789_p8)
}
 0x242   :  { %s793_s6 = scalar_lea.hbm %s963_s7, 256 }
 0x243   :  { %p794_p9 = scmp.ne.s32.totalorder %s963_s7, %s793_s6  ;;  %p797_p10 = scmp.lt.u32.totalorder %s793_s6, %s963_s7 }
 0x245   :  { %p799_p11 = pnand %p797_p10, %p794_p9 }
 0x247   :  { %802 = shalt.err (!%p799_p11)
}
 0x248   :  { %504 = dma.vmem_to_hbm [thread:$0]  %s499_s9, 256, %s963_s7, [#allocation4], %s815_s1, %s815_s1, %s816_s25  }
 0x249   :  { %809 = dma.done.wait [#allocation4], 256  }
 0x24a   :  { %810 = vsyncadd [#allocation4], 4294967040 }
 0x24b   :  { %508 = vsyncpa [#allocation3], 1 }
 0x24c   :  { %509 = vsyncpa [#allocation6], 1 }
 0x24d   :  { %510 = vsyncpa [#allocation9], 1 }
 0x24e   :  { %511 = vsyncpa [#allocation4], 1 }

</bundles_post_ra>
